<compile_context>
chip_gen: v6e
topology: v6e:2x2x1
jax: 0.10.0
libtpu: 0.0.40
codegen_flags: <defaults>
</compile_context>

<pallas_src>
import functools

import jax
import jax.numpy as jnp
from jax.experimental import pallas as pl
from jax.experimental.pallas import tpu as pltpu


def _round_up(n, m):
    return ((n + m - 1) // m) * m


def _round_down(n, m):
    return (n // m) * m


def _linear_kernel(x_ref, w_ref, b_ref, o_ref, acc_ref, *, td, d, mask_d):
    # x_ref: (TB, TD) VMEM tile (streamed), w_ref: (1, TD) VMEM chunk,
    # b_ref: (1, 1) SMEM scalar, o_ref: (TB, 1) VMEM, acc_ref: (TB, 1) f32 scratch.
    k = pl.program_id(1)

    @pl.when(k == 0)
    def _init():
        acc_ref[...] = jnp.zeros_like(acc_ref)

    prod = x_ref[...] * w_ref[...]                      # VPU broadcast-mul, (TB, TD)
    if mask_d:  # static flag: only traced when D % TD != 0 (ragged last D chunk)
        col = jax.lax.broadcasted_iota(jnp.int32, prod.shape, 1) + k * td
        prod = jnp.where(col < d, prod, 0.0)
    acc_ref[...] += jnp.sum(prod, axis=-1, keepdims=True)   # XLU lane reduce

    @pl.when(k == pl.num_programs(1) - 1)
    def _finalize():
        o_ref[...] = (acc_ref[...] + b_ref[0, 0]).astype(o_ref.dtype)


def logistic_regression_forward(x, weight, bias):
    """Forward of nn.Linear(input_dim, 1): y = x @ W.T + b.

    x: (B, D) float32, weight: (1, D) (PyTorch nn.Linear layout), bias: (1,).
    """
    B, D = x.shape

    x = x.astype(jnp.float32)
    w2 = weight.reshape(1, D).astype(jnp.float32)
    b2 = bias.reshape(1, 1).astype(jnp.float32)

    # Per-generation VMEM budget (v5e/v6e: 128 MiB physical, v7x: 64 MiB per TC).
    try:
        vmem_cap = int(pltpu.get_tpu_info().vmem_capacity_bytes)
    except Exception:
        vmem_cap = 64 * 1024 * 1024  # conservative (v7x-sized) fallback
    vmem_budget = vmem_cap // 2      # headroom for compiler scratch / temporaries

    # Feature (lane) chunking: TD is either the full D or a multiple of 128, so the
    # (8, 128) block constraint is always satisfied and VMEM is bounded for any D.
    TD_CAP = 2048
    TD = D if D <= TD_CAP else TD_CAP
    num_k = pl.cdiv(D, TD)
    mask_d = (D % TD) != 0

    # Batch tile sized by bytes: ~4 MiB streamed x tile per grid step, bounded by
    # (2x double-buffered x tile + (TB, TD) f32 product temp) <= VMEM budget.
    row_bytes = TD * 4
    TB = max(8, _round_down((4 * 1024 * 1024) // row_bytes, 8))
    TB = min(TB, max(8, _round_down(vmem_budget // (3 * row_bytes), 8)))
    TB = min(TB, _round_up(B, 8))          # never larger than the batch
    if B >= 16:                            # v7x megacore: keep >= 2 batch tiles
        TB = min(TB, _round_up(pl.cdiv(B, 2), 8))
    num_b = pl.cdiv(B, TB)

    # Raise scoped VMEM only as far as the footprint needs (<= ~90% of physical).
    footprint = 3 * TB * row_bytes + 2 * row_bytes + 6 * TB * 4 + (2 << 20)
    vmem_limit = int(min((vmem_cap * 9) // 10, max(footprint, 32 * 1024 * 1024)))

    kernel = functools.partial(_linear_kernel, td=TD, d=D, mask_d=mask_d)

    return pl.pallas_call(
        kernel,
        out_shape=jax.ShapeDtypeStruct((B, 1), x.dtype),
        grid=(num_b, num_k),
        in_specs=[
            pl.BlockSpec((TB, TD), lambda i, k: (i, k)),             # streamed x tiles
            pl.BlockSpec((1, TD), lambda i, k: (0, k)),              # weight chunk
            pl.BlockSpec(memory_space=pltpu.MemorySpace.SMEM),       # scalar bias
        ],
        out_specs=pl.BlockSpec((TB, 1), lambda i, k: (i, 0)),        # acc-resident tile
        scratch_shapes=[pltpu.VMEM((TB, 1), jnp.float32)],
        compiler_params=pltpu.CompilerParams(
            dimension_semantics=("parallel", "arbitrary"),
            vmem_limit_bytes=vmem_limit,
        ),
        cost_estimate=pl.CostEstimate(
            flops=2 * B * D,
            transcendentals=0,
            bytes_accessed=B * D * 4 + D * 4 + B * 4,
        ),
    )(x, w2, b2)


if __name__ == "__main__":
    key = jax.random.PRNGKey(0)
    k_x, k_w, k_b = jax.random.split(key, 3)

    B, D = 8, 32  # small shapes consistent with nn.Linear(input_dim=D, 1)

    x = jax.random.normal(k_x, (B, D), dtype=jnp.float32)

    # Deterministic init mimicking PyTorch nn.Linear: U(-1/sqrt(D), 1/sqrt(D))
    bound = 1.0 / (D ** 0.5)
    weight = jax.random.uniform(k_w, (1, D), minval=-bound, maxval=bound,
                                dtype=jnp.float32)
    bias = jax.random.uniform(k_b, (1,), minval=-bound, maxval=bound,
                              dtype=jnp.float32)

    out = logistic_regression_forward(x, weight, bias)
    jax.block_until_ready(out)

    # Sanity check against plain-JAX reference.
    ref = x @ weight.T + bias
    assert out.shape == (B, 1)
    assert jnp.allclose(out, ref, atol=1e-5, rtol=1e-5)

    print("KERNEL_OK")
</pallas_src>

<mosaic_0001>
module attributes {stable_mosaic.version = 11 : i64} {
  func.func @_linear_kernel(%arg0: i32, %arg1: i32, %arg2: memref<8x32xf32, #tpu.memory_space<vmem>>, %arg3: memref<1x32xf32, #tpu.memory_space<vmem>>, %arg4: memref<1x1xf32, #tpu.memory_space<smem>>, %arg5: memref<8x1xf32, #tpu.memory_space<vmem>>, %arg6: memref<8x1xf32, #tpu.memory_space<vmem>>) attributes {dimension_semantics = [#tpu.dimension_semantics<parallel>, #tpu.dimension_semantics<arbitrary>], iteration_bounds = array<i64: 1, 1>, scalar_prefetch = 0 : i64, scratch_operands = 1 : i64, tpu.core_type = #tpu.core_type<tc>, window_params = [{transform_indices = @transform_0, window_bounds = array<i64: 8, 32>}, {transform_indices = @transform_1, window_bounds = array<i64: 1, 32>}, {transform_indices = @transform_2, window_bounds = array<i64: 1, 1>}, {transform_indices = @transform_3, window_bounds = array<i64: 8, 1>}]} {
    %c0_i32 = arith.constant 0 : i32
    %0 = arith.cmpi eq, %arg1, %c0_i32 : i32
    %1 = arith.extui %0 : i1 to i32
    %c0_i32_0 = arith.constant 0 : i32
    %2 = arith.cmpi ne, %1, %c0_i32_0 : i32
    scf.if %2 {
      %cst_10 = arith.constant 0.000000e+00 : f32
      %15 = vector.broadcast %cst_10 : f32 to vector<8x1xf32>
      %c0_11 = arith.constant 0 : index
      %c0_12 = arith.constant 0 : index
      %16 = vector.load %arg6[%c0_11, %c0_12] : memref<8x1xf32, #tpu.memory_space<vmem>>, vector<8x1xf32>
      tpu.vector_store %arg6[%c0_11, %c0_12], %15 {strides = array<i32>} : memref<8x1xf32, #tpu.memory_space<vmem>>, vector<8x1xf32>,
    } else {
    }
    %c0 = arith.constant 0 : index
    %c0_1 = arith.constant 0 : index
    %3 = vector.load %arg2[%c0, %c0_1] : memref<8x32xf32, #tpu.memory_space<vmem>>, vector<8x32xf32>
    %c0_2 = arith.constant 0 : index
    %c0_3 = arith.constant 0 : index
    %4 = vector.load %arg3[%c0_2, %c0_3] : memref<1x32xf32, #tpu.memory_space<vmem>>, vector<1x32xf32>
    %5 = vector.broadcast %4 : vector<1x32xf32> to vector<8x32xf32>
    %6 = arith.mulf %3, %5 : vector<8x32xf32>
    %c0_4 = arith.constant 0 : index
    %c0_5 = arith.constant 0 : index
    %7 = vector.load %arg6[%c0_4, %c0_5] : memref<8x1xf32, #tpu.memory_space<vmem>>, vector<8x1xf32>
    %cst = arith.constant dense<0.000000e+00> : vector<8xf32>
    %8 = vector.multi_reduction <add>, %6, %cst [1] : vector<8x32xf32> to vector<8xf32>
    %9 = vector.shape_cast %8 : vector<8xf32> to vector<8x1xf32>
    %10 = arith.addf %7, %9 : vector<8x1xf32>
    %c0_6 = arith.constant 0 : index
    %c0_7 = arith.constant 0 : index
    %11 = vector.load %arg6[%c0_6, %c0_7] : memref<8x1xf32, #tpu.memory_space<vmem>>, vector<8x1xf32>
    tpu.vector_store %arg6[%c0_6, %c0_7], %10 {strides = array<i32>} : memref<8x1xf32, #tpu.memory_space<vmem>>, vector<8x1xf32>,
    %c0_i32_8 = arith.constant 0 : i32
    %12 = arith.cmpi eq, %arg1, %c0_i32_8 : i32
    %13 = arith.extui %12 : i1 to i32
    %c0_i32_9 = arith.constant 0 : i32
    %14 = arith.cmpi ne, %13, %c0_i32_9 : i32
    scf.if %14 {
      %c0_10 = arith.constant 0 : index
      %c0_11 = arith.constant 0 : index
      %15 = vector.load %arg6[%c0_10, %c0_11] : memref<8x1xf32, #tpu.memory_space<vmem>>, vector<8x1xf32>
      %c0_12 = arith.constant 0 : index
      %c0_13 = arith.constant 0 : index
      %16 = memref.load %arg4[%c0_12, %c0_13] : memref<1x1xf32, #tpu.memory_space<smem>>
      %17 = vector.broadcast %16 : f32 to vector<8x1xf32>
      %18 = arith.addf %15, %17 : vector<8x1xf32>
      %c0_14 = arith.constant 0 : index
      %c0_15 = arith.constant 0 : index
      %19 = vector.load %arg5[%c0_14, %c0_15] : memref<8x1xf32, #tpu.memory_space<vmem>>, vector<8x1xf32>
      tpu.vector_store %arg5[%c0_14, %c0_15], %18 {strides = array<i32>} : memref<8x1xf32, #tpu.memory_space<vmem>>, vector<8x1xf32>,
    } else {
    }
    return
  }
  func.func @transform_0(%arg0: i32, %arg1: i32) -> (i32, i32) {
    %c0_i32 = arith.constant 0 : i32
    return %arg0, %arg1 : i32, i32
  }
  func.func @transform_1(%arg0: i32, %arg1: i32) -> (i32, i32) {
    %c0_i32 = arith.constant 0 : i32
    %c0_i32_0 = arith.constant 0 : i32
    return %c0_i32, %arg1 : i32, i32
  }
  func.func @transform_2(%arg0: i32, %arg1: i32) -> (i32, i32) {
    %c0_i32 = arith.constant 0 : i32
    %c0_i32_0 = arith.constant 0 : i32
    %c0_i32_1 = arith.constant 0 : i32
    return %c0_i32, %c0_i32_0 : i32, i32
  }
  func.func @transform_3(%arg0: i32, %arg1: i32) -> (i32, i32) {
    %c0_i32 = arith.constant 0 : i32
    %c0_i32_0 = arith.constant 0 : i32
    return %arg0, %c0_i32 : i32, i32
  }
}

</mosaic_0001>

<bundles_post_ra>
// kernel: tpu_custom_call.1
= control target key start
LH: loop header
LB: loop body
LE: loop exit
PB: predicated region body
PF: predicated region fallthrough
CT: control target
= control target key end

     0   :  { %9 = vsyncpa [#allocation5], 0  ;;  %s88_s12 = smov [#allocation4]   ;;  %s125_s0 = inlined_call_operand.hbm [shape: f32[8,32], index: 0, kind: input, shape index: {}]   ;;  %s126_s1 = inlined_call_operand.vmem [shape: f32[1,32], index: 1, kind: input, shape index: {}]   ;;  %s127_s2 = inlined_call_operand.<no memory space> [shape: f32[1,1], index: 2, kind: input, shape index: {}]   ;;  %s128_s3 = inlined_call_operand.vmem [shape: f32[8,1], index: 3, kind: output, shape index: {}]  }
   0x1   :  { %s16_s13 = sshll.u32 %s88_s12, 4  ;;  %s17_s13 = int_to_ptr.vmem [resolvable:$true] %s16_s13 }
   0x2   :  { %s74_s14 = scalar_lea.vmem %s17_s13, 128  ;;  %p79_p1 = scmp.lt.s32.totalorder %s17_s13, %s17_s13 }
   0x3   :  { %p75_p0 = scmp.ne.s32.totalorder %s17_s13, %s74_s14  ;;  %p80_p2 = scmp.lt.s32.totalorder %s74_s14, %s74_s14 }
   0x5   :  { %p81_p3 = por %p80_p2, %p79_p1 }
   0x7   :  { %p82_p4 = pnand %p81_p3, %p75_p0 }
   0x9   :  { %85 = shalt.err (!%p82_p4)
}
   0xa   :  { %19 = dma.hbm_to_vmem [thread:$0]  %s125_s0, 128, %s17_s13, [#allocation5]  }
   0xb   :  { %86 = dma.done.wait [#allocation5], 128  }
   0xc   :  { %87 = vsyncadd [#allocation5], 4294967168  ;;  %vm31_vm0 = vcmask 7168   ;;  %v89_v0 = vmov 0.0   ;;  %v33_v1 = vld [vmem:[#allocation4] sm:$0xff]  ;;  %vm43_vm1 = vcmask 261120   ;;  %v55_v8 = vstv %s127_s2 }
   0xd   :  { %32 = vst.msk [vmem:[#allocation2] sm:$0xff] %vm31_vm0, %v89_v0  ;;  %v63_v2 = vld [vmem:[%s126_s1] ss:$0 sm:$0xff] }
   0xe   :  { %v41_v3 = vmul.f32 %v63_v2, %v33_v1 }
  0x10   :  { %v44_v4 = vsel %vm43_vm1, %v41_v3, 0.0 }
  0x11   :  { %45 = vadd.xlane.f32.xlu0 %v44_v4 }
  0x14   :  { %v42_v5 = vld [vmem:[#allocation2] sm:$0xff] }
  0x9a   :  { %v46_v6 = vpop.xlane.xlu0 %45 }
  0x9b   :  { %v47_v7 = vadd.f32 %v46_v6, %v42_v5 }
  0x9d   :  { %49 = vst.msk [vmem:[#allocation2] sm:$0xff] %vm31_vm0, %v47_v7 }
  0xa4   :  { %v53_v9 = vld [vmem:[#allocation2] sm:$0xff] }
  0xa5   :  { %v56_v10 = vadd.f32 %v55_v8, %v53_v9 }
  0xa7   :  { %57 = vst.msk [vmem:[%s128_s3] sm:$0xff] %vm31_vm0, %v56_v10 }
  0xa8   :  { %62 = vsyncpa [#allocation5], 1 }

</bundles_post_ra>
